<compile_context>
chip_gen: v6e
topology: v6e:2x2x1
jax: 0.10.0
libtpu: 0.0.40
codegen_flags: <defaults>
</compile_context>

<pallas_src>
import functools

import jax
import jax.numpy as jnp
from jax.experimental import pallas as pl
from jax.experimental.pallas import tpu as pltpu


def _double_conv_kernel(x_ref, w1_ref, b1_ref, w2_ref, b2_ref, o_ref,
                        xe, y1e, *, H, W, Cin, Cout, slope, pad):
    # x_ref : (1, Cin, H*W)        one image, channels on sublanes, spatial on lanes
    # w1_ref: (9, Cout, Cin)       conv1 weights, one transposed (Cout, Cin) slab per tap
    # b1_ref: (Cout, 1)
    # w2_ref: (9, Cout, Cout)
    # b2_ref: (Cout, 1)
    # o_ref : (1, Cout, H*W)       lane-dense output block
    # xe    : (Cin,  H*W + 2*pad)  zero-extended flattened input       (VMEM scratch)
    # y1e   : (Cout, H*W + 2*pad)  zero-extended conv1 activation      (VMEM scratch)
    HW = H * W
    f32 = jnp.float32

    # Zero only the halos (lane-aligned, pad % 128 == 0).  Cheap enough to do
    # unconditionally each step -> correct even when the batch grid axis is
    # partitioned across TensorCores (no program_id==0 init hazard).
    xe[:, :pad] = jnp.zeros((Cin, pad), xe.dtype)
    xe[:, pad + HW:] = jnp.zeros((Cin, pad), xe.dtype)
    y1e[:, :pad] = jnp.zeros((Cout, pad), y1e.dtype)
    y1e[:, pad + HW:] = jnp.zeros((Cout, pad), y1e.dtype)

    # Interior copy: single lane-aligned full-width store.
    xe[:, pad:pad + HW] = x_ref[0].astype(xe.dtype)

    # Column-validity masks: the zero extension handles the top/bottom (row)
    # halo; only horizontal wrap-around of the flattened layout needs masking.
    col = jax.lax.broadcasted_iota(jnp.int32, (1, HW), 1) % W
    mask_l = (col != 0).astype(f32)        # taps with dx == 0 (read column x-1)
    mask_r = (col != W - 1).astype(f32)    # taps with dx == 2 (read column x+1)

    def conv3x3_bias_leaky(src_ref, w_ref, b_ref):
        # Nine small MXU matmuls accumulated in f32 (no im2col slab).  Each tap
        # is a static ref slice (zero-cost view) of the zero-extended image.
        parts = []
        for dx in range(3):
            part = None
            for dy in range(3):
                t = dy * 3 + dx
                start = pad + (dy - 1) * W + (dx - 1)
                sl = src_ref[:, start:start + HW]                 # (C, HW)
                mm = jnp.dot(w_ref[t], sl, preferred_element_type=f32)
                part = mm if part is None else part + mm
            parts.append(part)
        acc = parts[0] * mask_l + parts[1] + parts[2] * mask_r    # (Cout, HW)
        acc = acc + b_ref[...].astype(f32)                        # bias
        return jnp.where(acc >= 0, acc, slope * acc)              # LeakyReLU

    # conv1 + LeakyReLU -> VMEM scratch (intermediate never touches HBM).
    y1 = conv3x3_bias_leaky(xe, w1_ref, b1_ref)                   # (Cout, HW) f32
    y1e[:, pad:pad + HW] = y1.astype(y1e.dtype)

    # conv2 + LeakyReLU -> lane-dense output store.
    y2 = conv3x3_bias_leaky(y1e, w2_ref, b2_ref)                  # (Cout, HW) f32
    o_ref[...] = y2.reshape(1, Cout, HW).astype(o_ref.dtype)


def double_conv2d(x_nchw, params, *, slope=0.2):
    """Forward pass of Double_Conv2d.  x_nchw: (N, Cin, H, W) -> (N, Cout, H, W)."""
    w1, b1, w2, b2 = params                       # w: (3, 3, Cin, Cout) HWIO
    N, Cin, H, W = x_nchw.shape
    Cout = w1.shape[-1]
    HW = H * W
    pad = ((W + 1 + 127) // 128) * 128            # lane-aligned halo >= W + 1

    # Channels-first with spatial flattened onto lanes: metadata-only reshape.
    x = x_nchw.reshape(N, Cin, HW)

    # Per-tap transposed weights: wT[t] = W[dy, dx].T so that
    # out(Cout, HW) = sum_t wT[t] @ shifted_input_t(C, HW).
    w1t = jnp.transpose(w1, (0, 1, 3, 2)).reshape(9, Cout, Cin)
    w2t = jnp.transpose(w2, (0, 1, 3, 2)).reshape(9, Cout, Cout)
    b1c = b1.reshape(Cout, 1)
    b2c = b2.reshape(Cout, 1)

    kernel = functools.partial(
        _double_conv_kernel, H=H, W=W, Cin=Cin, Cout=Cout, slope=slope, pad=pad)

    # VMEM budget estimate; cap per generation (~3/4 of physical VMEM:
    # ~96 MiB on v5e/v6e 128 MiB parts, ~48 MiB on v7x 64 MiB parts).
    itemsize = jnp.dtype(x.dtype).itemsize
    est = (2 * (Cin + Cout) * HW * itemsize                       # dbl-buffered I/O blocks
           + 2 * (9 * Cout * (Cin + Cout) + 2 * Cout) * 4         # weights + bias
           + (Cin + Cout) * (HW + 2 * pad) * itemsize)            # padded scratches
    cap = 128 << 20
    try:
        cap = int(getattr(pltpu.get_tpu_info(), "vmem_capacity_bytes", cap))
    except Exception:
        pass
    vmem_limit = int(min(max(2 * est + (4 << 20), 32 << 20), cap * 3 // 4))

    y = pl.pallas_call(
        kernel,
        out_shape=jax.ShapeDtypeStruct((N, Cout, HW), x.dtype),
        grid=(N,),
        in_specs=[
            pl.BlockSpec((1, Cin, HW), lambda n: (n, 0, 0)),
            pl.BlockSpec((9, Cout, Cin), lambda n: (0, 0, 0)),
            pl.BlockSpec((Cout, 1), lambda n: (0, 0)),
            pl.BlockSpec((9, Cout, Cout), lambda n: (0, 0, 0)),
            pl.BlockSpec((Cout, 1), lambda n: (0, 0)),
        ],
        out_specs=pl.BlockSpec((1, Cout, HW), lambda n: (n, 0, 0)),
        scratch_shapes=[
            pltpu.VMEM((Cin, HW + 2 * pad), x.dtype),    # zero-extended input
            pltpu.VMEM((Cout, HW + 2 * pad), x.dtype),   # zero-extended conv1 act
        ],
        compiler_params=pltpu.CompilerParams(
            dimension_semantics=("parallel",),
            vmem_limit_bytes=vmem_limit,
        ),
    )(x, w1t, b1c, w2t, b2c)

    # (N, Cout, H*W) -> (N, Cout, H, W): pure metadata split of the last dim.
    return y.reshape(N, Cout, H, W)


def init_params(key, in_channel, out_channel, dtype=jnp.float32):
    """Deterministic synthetic init (PyTorch-default-like uniform fan_in bound)."""
    k1, k2, k3, k4 = jax.random.split(key, 4)
    bound1 = 1.0 / jnp.sqrt(in_channel * 9)
    bound2 = 1.0 / jnp.sqrt(out_channel * 9)
    # Weights stored HWIO: (3, 3, Cin, Cout)
    w1 = jax.random.uniform(k1, (3, 3, in_channel, out_channel), dtype,
                            minval=-bound1, maxval=bound1)
    b1 = jax.random.uniform(k2, (out_channel,), dtype, minval=-bound1, maxval=bound1)
    w2 = jax.random.uniform(k3, (3, 3, out_channel, out_channel), dtype,
                            minval=-bound2, maxval=bound2)
    b2 = jax.random.uniform(k4, (out_channel,), dtype, minval=-bound2, maxval=bound2)
    return (w1, b1, w2, b2)


def _reference(x_nchw, params):
    """Pure-JAX reference (lax conv) for correctness checking."""
    w1, b1, w2, b2 = params

    def conv(x, w, b):
        y = jax.lax.conv_general_dilated(
            x, w, window_strides=(1, 1), padding=((1, 1), (1, 1)),
            dimension_numbers=("NCHW", "HWIO", "NCHW"))
        y = y + b[None, :, None, None]
        return jnp.where(y >= 0, y, 0.2 * y)

    return conv(conv(x_nchw, w1, b1), w2, b2)


if __name__ == "__main__":
    key = jax.random.PRNGKey(0)
    kx, kp = jax.random.split(key)

    N, Cin, Cout, H, W = 2, 4, 8, 16, 16
    x = jax.random.normal(kx, (N, Cin, H, W), jnp.float32)
    params = init_params(kp, Cin, Cout)

    out = double_conv2d(x, params)
    out = jax.block_until_ready(out)

    ref = _reference(x, params)
    assert out.shape == (N, Cout, H, W)
    assert jnp.allclose(out, ref, atol=1e-5, rtol=1e-5), "mismatch vs reference"

    print("KERNEL_OK")
</pallas_src>

<mosaic_0001>
module attributes {stable_mosaic.version = 11 : i64} {
  func.func @_double_conv_kernel(%arg0: i32, %arg1: memref<1x4x256xf32, #tpu.memory_space<vmem>>, %arg2: memref<9x8x4xf32, #tpu.memory_space<vmem>>, %arg3: memref<8x1xf32, #tpu.memory_space<vmem>>, %arg4: memref<9x8x8xf32, #tpu.memory_space<vmem>>, %arg5: memref<8x1xf32, #tpu.memory_space<vmem>>, %arg6: memref<1x8x256xf32, #tpu.memory_space<vmem>>, %arg7: memref<4x512xf32, #tpu.memory_space<vmem>>, %arg8: memref<8x512xf32, #tpu.memory_space<vmem>>) attributes {dimension_semantics = [#tpu.dimension_semantics<parallel>], iteration_bounds = array<i64: 2>, scalar_prefetch = 0 : i64, scratch_operands = 2 : i64, tpu.core_type = #tpu.core_type<tc>, window_params = [{transform_indices = @transform_0, window_bounds = array<i64: 1, 4, 256>}, {pipeline_mode = #tpu.pipeline_mode<synchronous>, transform_indices = @transform_1, window_bounds = array<i64: 9, 8, 4>}, {pipeline_mode = #tpu.pipeline_mode<synchronous>, transform_indices = @transform_2, window_bounds = array<i64: 8, 1>}, {pipeline_mode = #tpu.pipeline_mode<synchronous>, transform_indices = @transform_3, window_bounds = array<i64: 9, 8, 8>}, {pipeline_mode = #tpu.pipeline_mode<synchronous>, transform_indices = @transform_4, window_bounds = array<i64: 8, 1>}, {transform_indices = @transform_5, window_bounds = array<i64: 1, 8, 256>}]} {
    %cst = arith.constant 0.000000e+00 : f32
    %0 = vector.broadcast %cst : f32 to vector<4x128xf32>
    %c0 = arith.constant 0 : index
    %c0_0 = arith.constant 0 : index
    %1 = vector.load %arg7[%c0, %c0_0] : memref<4x512xf32, #tpu.memory_space<vmem>>, vector<4x128xf32>
    tpu.vector_store %arg7[%c0, %c0_0], %0 {strides = array<i32>} : memref<4x512xf32, #tpu.memory_space<vmem>>, vector<4x128xf32>,
    %cst_1 = arith.constant 0.000000e+00 : f32
    %2 = vector.broadcast %cst_1 : f32 to vector<4x128xf32>
    %c0_2 = arith.constant 0 : index
    %c384 = arith.constant 384 : index
    %3 = vector.load %arg7[%c0_2, %c384] : memref<4x512xf32, #tpu.memory_space<vmem>>, vector<4x128xf32>
    tpu.vector_store %arg7[%c0_2, %c384], %2 {strides = array<i32>} : memref<4x512xf32, #tpu.memory_space<vmem>>, vector<4x128xf32>,
    %cst_3 = arith.constant 0.000000e+00 : f32
    %4 = vector.broadcast %cst_3 : f32 to vector<8x128xf32>
    %c0_4 = arith.constant 0 : index
    %c0_5 = arith.constant 0 : index
    %5 = vector.load %arg8[%c0_4, %c0_5] : memref<8x512xf32, #tpu.memory_space<vmem>>, vector<8x128xf32>
    tpu.vector_store %arg8[%c0_4, %c0_5], %4 {strides = array<i32>} : memref<8x512xf32, #tpu.memory_space<vmem>>, vector<8x128xf32>,
    %cst_6 = arith.constant 0.000000e+00 : f32
    %6 = vector.broadcast %cst_6 : f32 to vector<8x128xf32>
    %c0_7 = arith.constant 0 : index
    %c384_8 = arith.constant 384 : index
    %7 = vector.load %arg8[%c0_7, %c384_8] : memref<8x512xf32, #tpu.memory_space<vmem>>, vector<8x128xf32>
    tpu.vector_store %arg8[%c0_7, %c384_8], %6 {strides = array<i32>} : memref<8x512xf32, #tpu.memory_space<vmem>>, vector<8x128xf32>,
    %c0_9 = arith.constant 0 : index
    %c0_10 = arith.constant 0 : index
    %c0_11 = arith.constant 0 : index
    %8 = vector.load %arg1[%c0_9, %c0_10, %c0_11] : memref<1x4x256xf32, #tpu.memory_space<vmem>>, vector<1x4x256xf32>
    %9 = vector.shape_cast %8 : vector<1x4x256xf32> to vector<4x256xf32>
    %c0_12 = arith.constant 0 : index
    %c128 = arith.constant 128 : index
    %10 = vector.load %arg7[%c0_12, %c128] : memref<4x512xf32, #tpu.memory_space<vmem>>, vector<4x256xf32>
    tpu.vector_store %arg7[%c0_12, %c128], %9 {strides = array<i32>} : memref<4x512xf32, #tpu.memory_space<vmem>>, vector<4x256xf32>,
    %11 = tpu.iota {dimensions = array<i32: 1>} : vector<1x256xi32>
    %c16_i32 = arith.constant 16 : i32
    %c0_i32 = arith.constant 0 : i32
    %12 = arith.cmpi eq, %c16_i32, %c0_i32 : i32
    %c1_i32 = arith.constant 1 : i32
    %13 = arith.select %12, %c1_i32, %c16_i32 : i32
    %14 = vector.broadcast %13 : i32 to vector<1x256xi32>
    %15 = arith.remsi %11, %14 : vector<1x256xi32>
    %c0_i32_13 = arith.constant 0 : i32
    %16 = vector.broadcast %c0_i32_13 : i32 to vector<1x256xi32>
    %17 = arith.cmpi ne, %15, %16 : vector<1x256xi32>
    %c0_i32_14 = arith.constant 0 : i32
    %18 = vector.broadcast %c0_i32_14 : i32 to vector<1x256xi32>
    %19 = arith.cmpi slt, %15, %18 : vector<1x256xi32>
    %c0_i32_15 = arith.constant 0 : i32
    %20 = arith.cmpi slt, %13, %c0_i32_15 : i32
    %21 = vector.broadcast %20 : i1 to vector<1x256xi1>
    %22 = vector.broadcast %21 : vector<1x256xi1> to vector<1x256xi1>
    %23 = arith.xori %19, %22 : vector<1x256xi1>
    %24 = arith.andi %23, %17 : vector<1x256xi1>
    %25 = vector.broadcast %13 : i32 to vector<1x256xi32>
    %26 = arith.addi %15, %25 : vector<1x256xi32>
    %27 = arith.select %24, %26, %15 : vector<1x256xi1>, vector<1x256xi32>
    %c0_i32_16 = arith.constant 0 : i32
    %28 = vector.broadcast %c0_i32_16 : i32 to vector<1x256xi32>
    %29 = arith.cmpi ne, %27, %28 : vector<1x256xi32>
    %30 = arith.extui %29 : vector<1x256xi1> to vector<1x256xi32>
    %31 = arith.sitofp %30 : vector<1x256xi32> to vector<1x256xf32>
    %c15_i32 = arith.constant 15 : i32
    %32 = vector.broadcast %c15_i32 : i32 to vector<1x256xi32>
    %33 = arith.cmpi ne, %27, %32 : vector<1x256xi32>
    %34 = arith.extui %33 : vector<1x256xi1> to vector<1x256xi32>
    %35 = arith.sitofp %34 : vector<1x256xi32> to vector<1x256xf32>
    %c0_17 = arith.constant 0 : index
    %c111 = arith.constant 111 : index
    %36 = vector.load %arg7[%c0_17, %c111] : memref<4x512xf32, #tpu.memory_space<vmem>>, vector<4x256xf32>
    %c0_18 = arith.constant 0 : index
    %c0_19 = arith.constant 0 : index
    %c0_20 = arith.constant 0 : index
    %37 = vector.load %arg2[%c0_18, %c0_19, %c0_20] : memref<9x8x4xf32, #tpu.memory_space<vmem>>, vector<1x8x4xf32>
    %38 = vector.shape_cast %37 : vector<1x8x4xf32> to vector<8x4xf32>
    %cst_21 = arith.constant dense<0.000000e+00> : vector<8x256xf32>
    %39 = tpu.matmul %38, %36, %cst_21 {dimension_numbers = #tpu.dot_dimension_numbers<[1], [0], [0], [1], [0, 0, 1, 1], [], []>} : vector<8x4xf32>, vector<4x256xf32>, vector<8x256xf32> -> vector<8x256xf32>
    %c0_22 = arith.constant 0 : index
    %c127 = arith.constant 127 : index
    %40 = vector.load %arg7[%c0_22, %c127] : memref<4x512xf32, #tpu.memory_space<vmem>>, vector<4x256xf32>
    %c3 = arith.constant 3 : index
    %c0_23 = arith.constant 0 : index
    %c0_24 = arith.constant 0 : index
    %41 = vector.load %arg2[%c3, %c0_23, %c0_24] : memref<9x8x4xf32, #tpu.memory_space<vmem>>, vector<1x8x4xf32>
    %42 = vector.shape_cast %41 : vector<1x8x4xf32> to vector<8x4xf32>
    %cst_25 = arith.constant dense<0.000000e+00> : vector<8x256xf32>
    %43 = tpu.matmul %42, %40, %cst_25 {dimension_numbers = #tpu.dot_dimension_numbers<[1], [0], [0], [1], [0, 0, 1, 1], [], []>} : vector<8x4xf32>, vector<4x256xf32>, vector<8x256xf32> -> vector<8x256xf32>
    %44 = arith.addf %39, %43 : vector<8x256xf32>
    %c0_26 = arith.constant 0 : index
    %c143 = arith.constant 143 : index
    %45 = vector.load %arg7[%c0_26, %c143] : memref<4x512xf32, #tpu.memory_space<vmem>>, vector<4x256xf32>
    %c6 = arith.constant 6 : index
    %c0_27 = arith.constant 0 : index
    %c0_28 = arith.constant 0 : index
    %46 = vector.load %arg2[%c6, %c0_27, %c0_28] : memref<9x8x4xf32, #tpu.memory_space<vmem>>, vector<1x8x4xf32>
    %47 = vector.shape_cast %46 : vector<1x8x4xf32> to vector<8x4xf32>
    %cst_29 = arith.constant dense<0.000000e+00> : vector<8x256xf32>
    %48 = tpu.matmul %47, %45, %cst_29 {dimension_numbers = #tpu.dot_dimension_numbers<[1], [0], [0], [1], [0, 0, 1, 1], [], []>} : vector<8x4xf32>, vector<4x256xf32>, vector<8x256xf32> -> vector<8x256xf32>
    %49 = arith.addf %44, %48 : vector<8x256xf32>
    %c0_30 = arith.constant 0 : index
    %c112 = arith.constant 112 : index
    %50 = vector.load %arg7[%c0_30, %c112] : memref<4x512xf32, #tpu.memory_space<vmem>>, vector<4x256xf32>
    %c1 = arith.constant 1 : index
    %c0_31 = arith.constant 0 : index
    %c0_32 = arith.constant 0 : index
    %51 = vector.load %arg2[%c1, %c0_31, %c0_32] : memref<9x8x4xf32, #tpu.memory_space<vmem>>, vector<1x8x4xf32>
    %52 = vector.shape_cast %51 : vector<1x8x4xf32> to vector<8x4xf32>
    %cst_33 = arith.constant dense<0.000000e+00> : vector<8x256xf32>
    %53 = tpu.matmul %52, %50, %cst_33 {dimension_numbers = #tpu.dot_dimension_numbers<[1], [0], [0], [1], [0, 0, 1, 1], [], []>} : vector<8x4xf32>, vector<4x256xf32>, vector<8x256xf32> -> vector<8x256xf32>
    %c0_34 = arith.constant 0 : index
    %c128_35 = arith.constant 128 : index
    %54 = vector.load %arg7[%c0_34, %c128_35] : memref<4x512xf32, #tpu.memory_space<vmem>>, vector<4x256xf32>
    %c4 = arith.constant 4 : index
    %c0_36 = arith.constant 0 : index
    %c0_37 = arith.constant 0 : index
    %55 = vector.load %arg2[%c4, %c0_36, %c0_37] : memref<9x8x4xf32, #tpu.memory_space<vmem>>, vector<1x8x4xf32>
    %56 = vector.shape_cast %55 : vector<1x8x4xf32> to vector<8x4xf32>
    %cst_38 = arith.constant dense<0.000000e+00> : vector<8x256xf32>
    %57 = tpu.matmul %56, %54, %cst_38 {dimension_numbers = #tpu.dot_dimension_numbers<[1], [0], [0], [1], [0, 0, 1, 1], [], []>} : vector<8x4xf32>, vector<4x256xf32>, vector<8x256xf32> -> vector<8x256xf32>
    %58 = arith.addf %53, %57 : vector<8x256xf32>
    %c0_39 = arith.constant 0 : index
    %c144 = arith.constant 144 : index
    %59 = vector.load %arg7[%c0_39, %c144] : memref<4x512xf32, #tpu.memory_space<vmem>>, vector<4x256xf32>
    %c7 = arith.constant 7 : index
    %c0_40 = arith.constant 0 : index
    %c0_41 = arith.constant 0 : index
    %60 = vector.load %arg2[%c7, %c0_40, %c0_41] : memref<9x8x4xf32, #tpu.memory_space<vmem>>, vector<1x8x4xf32>
    %61 = vector.shape_cast %60 : vector<1x8x4xf32> to vector<8x4xf32>
    %cst_42 = arith.constant dense<0.000000e+00> : vector<8x256xf32>
    %62 = tpu.matmul %61, %59, %cst_42 {dimension_numbers = #tpu.dot_dimension_numbers<[1], [0], [0], [1], [0, 0, 1, 1], [], []>} : vector<8x4xf32>, vector<4x256xf32>, vector<8x256xf32> -> vector<8x256xf32>
    %63 = arith.addf %58, %62 : vector<8x256xf32>
    %c0_43 = arith.constant 0 : index
    %c113 = arith.constant 113 : index
    %64 = vector.load %arg7[%c0_43, %c113] : memref<4x512xf32, #tpu.memory_space<vmem>>, vector<4x256xf32>
    %c2 = arith.constant 2 : index
    %c0_44 = arith.constant 0 : index
    %c0_45 = arith.constant 0 : index
    %65 = vector.load %arg2[%c2, %c0_44, %c0_45] : memref<9x8x4xf32, #tpu.memory_space<vmem>>, vector<1x8x4xf32>
    %66 = vector.shape_cast %65 : vector<1x8x4xf32> to vector<8x4xf32>
    %cst_46 = arith.constant dense<0.000000e+00> : vector<8x256xf32>
    %67 = tpu.matmul %66, %64, %cst_46 {dimension_numbers = #tpu.dot_dimension_numbers<[1], [0], [0], [1], [0, 0, 1, 1], [], []>} : vector<8x4xf32>, vector<4x256xf32>, vector<8x256xf32> -> vector<8x256xf32>
    %c0_47 = arith.constant 0 : index
    %c129 = arith.constant 129 : index
    %68 = vector.load %arg7[%c0_47, %c129] : memref<4x512xf32, #tpu.memory_space<vmem>>, vector<4x256xf32>
    %c5 = arith.constant 5 : index
    %c0_48 = arith.constant 0 : index
    %c0_49 = arith.constant 0 : index
    %69 = vector.load %arg2[%c5, %c0_48, %c0_49] : memref<9x8x4xf32, #tpu.memory_space<vmem>>, vector<1x8x4xf32>
    %70 = vector.shape_cast %69 : vector<1x8x4xf32> to vector<8x4xf32>
    %cst_50 = arith.constant dense<0.000000e+00> : vector<8x256xf32>
    %71 = tpu.matmul %70, %68, %cst_50 {dimension_numbers = #tpu.dot_dimension_numbers<[1], [0], [0], [1], [0, 0, 1, 1], [], []>} : vector<8x4xf32>, vector<4x256xf32>, vector<8x256xf32> -> vector<8x256xf32>
    %72 = arith.addf %67, %71 : vector<8x256xf32>
    %c0_51 = arith.constant 0 : index
    %c145 = arith.constant 145 : index
    %73 = vector.load %arg7[%c0_51, %c145] : memref<4x512xf32, #tpu.memory_space<vmem>>, vector<4x256xf32>
    %c8 = arith.constant 8 : index
    %c0_52 = arith.constant 0 : index
    %c0_53 = arith.constant 0 : index
    %74 = vector.load %arg2[%c8, %c0_52, %c0_53] : memref<9x8x4xf32, #tpu.memory_space<vmem>>, vector<1x8x4xf32>
    %75 = vector.shape_cast %74 : vector<1x8x4xf32> to vector<8x4xf32>
    %cst_54 = arith.constant dense<0.000000e+00> : vector<8x256xf32>
    %76 = tpu.matmul %75, %73, %cst_54 {dimension_numbers = #tpu.dot_dimension_numbers<[1], [0], [0], [1], [0, 0, 1, 1], [], []>} : vector<8x4xf32>, vector<4x256xf32>, vector<8x256xf32> -> vector<8x256xf32>
    %77 = arith.addf %72, %76 : vector<8x256xf32>
    %78 = vector.broadcast %31 : vector<1x256xf32> to vector<8x256xf32>
    %79 = arith.mulf %49, %78 : vector<8x256xf32>
    %80 = arith.addf %79, %63 : vector<8x256xf32>
    %81 = vector.broadcast %35 : vector<1x256xf32> to vector<8x256xf32>
    %82 = arith.mulf %77, %81 : vector<8x256xf32>
    %83 = arith.addf %80, %82 : vector<8x256xf32>
    %c0_55 = arith.constant 0 : index
    %c0_56 = arith.constant 0 : index
    %84 = vector.load %arg3[%c0_55, %c0_56] : memref<8x1xf32, #tpu.memory_space<vmem>>, vector<8x1xf32>
    %85 = vector.broadcast %84 : vector<8x1xf32> to vector<8x256xf32>
    %86 = arith.addf %83, %85 : vector<8x256xf32>
    %cst_57 = arith.constant 0.000000e+00 : f32
    %87 = vector.broadcast %cst_57 : f32 to vector<8x256xf32>
    %88 = arith.cmpf oge, %86, %87 : vector<8x256xf32>
    %cst_58 = arith.constant 2.000000e-01 : f32
    %89 = vector.broadcast %cst_58 : f32 to vector<8x256xf32>
    %90 = arith.mulf %89, %86 : vector<8x256xf32>
    %91 = arith.select %88, %86, %90 : vector<8x256xi1>, vector<8x256xf32>
    %c0_59 = arith.constant 0 : index
    %c128_60 = arith.constant 128 : index
    %92 = vector.load %arg8[%c0_59, %c128_60] : memref<8x512xf32, #tpu.memory_space<vmem>>, vector<8x256xf32>
    tpu.vector_store %arg8[%c0_59, %c128_60], %91 {strides = array<i32>} : memref<8x512xf32, #tpu.memory_space<vmem>>, vector<8x256xf32>,
    %c0_61 = arith.constant 0 : index
    %c111_62 = arith.constant 111 : index
    %93 = vector.load %arg8[%c0_61, %c111_62] : memref<8x512xf32, #tpu.memory_space<vmem>>, vector<8x256xf32>
    %c0_63 = arith.constant 0 : index
    %c0_64 = arith.constant 0 : index
    %c0_65 = arith.constant 0 : index
    %94 = vector.load %arg4[%c0_63, %c0_64, %c0_65] : memref<9x8x8xf32, #tpu.memory_space<vmem>>, vector<1x8x8xf32>
    %95 = vector.shape_cast %94 : vector<1x8x8xf32> to vector<8x8xf32>
    %cst_66 = arith.constant dense<0.000000e+00> : vector<8x256xf32>
    %96 = tpu.matmul %95, %93, %cst_66 {dimension_numbers = #tpu.dot_dimension_numbers<[1], [0], [0], [1], [0, 0, 1, 1], [], []>} : vector<8x8xf32>, vector<8x256xf32>, vector<8x256xf32> -> vector<8x256xf32>
    %c0_67 = arith.constant 0 : index
    %c127_68 = arith.constant 127 : index
    %97 = vector.load %arg8[%c0_67, %c127_68] : memref<8x512xf32, #tpu.memory_space<vmem>>, vector<8x256xf32>
    %c3_69 = arith.constant 3 : index
    %c0_70 = arith.constant 0 : index
    %c0_71 = arith.constant 0 : index
    %98 = vector.load %arg4[%c3_69, %c0_70, %c0_71] : memref<9x8x8xf32, #tpu.memory_space<vmem>>, vector<1x8x8xf32>
    %99 = vector.shape_cast %98 : vector<1x8x8xf32> to vector<8x8xf32>
    %cst_72 = arith.constant dense<0.000000e+00> : vector<8x256xf32>
    %100 = tpu.matmul %99, %97, %cst_72 {dimension_numbers = #tpu.dot_dimension_numbers<[1], [0], [0], [1], [0, 0, 1, 1], [], []>} : vector<8x8xf32>, vector<8x256xf32>, vector<8x256xf32> -> vector<8x256xf32>
    %101 = arith.addf %96, %100 : vector<8x256xf32>
    %c0_73 = arith.constant 0 : index
    %c143_74 = arith.constant 143 : index
    %102 = vector.load %arg8[%c0_73, %c143_74] : memref<8x512xf32, #tpu.memory_space<vmem>>, vector<8x256xf32>
    %c6_75 = arith.constant 6 : index
    %c0_76 = arith.constant 0 : index
    %c0_77 = arith.constant 0 : index
    %103 = vector.load %arg4[%c6_75, %c0_76, %c0_77] : memref<9x8x8xf32, #tpu.memory_space<vmem>>, vector<1x8x8xf32>
    %104 = vector.shape_cast %103 : vector<1x8x8xf32> to vector<8x8xf32>
    %cst_78 = arith.constant dense<0.000000e+00> : vector<8x256xf32>
    %105 = tpu.matmul %104, %102, %cst_78 {dimension_numbers = #tpu.dot_dimension_numbers<[1], [0], [0], [1], [0, 0, 1, 1], [], []>} : vector<8x8xf32>, vector<8x256xf32>, vector<8x256xf32> -> vector<8x256xf32>
    %106 = arith.addf %101, %105 : vector<8x256xf32>
    %c0_79 = arith.constant 0 : index
    %c112_80 = arith.constant 112 : index
    %107 = vector.load %arg8[%c0_79, %c112_80] : memref<8x512xf32, #tpu.memory_space<vmem>>, vector<8x256xf32>
    %c1_81 = arith.constant 1 : index
    %c0_82 = arith.constant 0 : index
    %c0_83 = arith.constant 0 : index
    %108 = vector.load %arg4[%c1_81, %c0_82, %c0_83] : memref<9x8x8xf32, #tpu.memory_space<vmem>>, vector<1x8x8xf32>
    %109 = vector.shape_cast %108 : vector<1x8x8xf32> to vector<8x8xf32>
    %cst_84 = arith.constant dense<0.000000e+00> : vector<8x256xf32>
    %110 = tpu.matmul %109, %107, %cst_84 {dimension_numbers = #tpu.dot_dimension_numbers<[1], [0], [0], [1], [0, 0, 1, 1], [], []>} : vector<8x8xf32>, vector<8x256xf32>, vector<8x256xf32> -> vector<8x256xf32>
    %c0_85 = arith.constant 0 : index
    %c128_86 = arith.constant 128 : index
    %111 = vector.load %arg8[%c0_85, %c128_86] : memref<8x512xf32, #tpu.memory_space<vmem>>, vector<8x256xf32>
    %c4_87 = arith.constant 4 : index
    %c0_88 = arith.constant 0 : index
    %c0_89 = arith.constant 0 : index
    %112 = vector.load %arg4[%c4_87, %c0_88, %c0_89] : memref<9x8x8xf32, #tpu.memory_space<vmem>>, vector<1x8x8xf32>
    %113 = vector.shape_cast %112 : vector<1x8x8xf32> to vector<8x8xf32>
    %cst_90 = arith.constant dense<0.000000e+00> : vector<8x256xf32>
    %114 = tpu.matmul %113, %111, %cst_90 {dimension_numbers = #tpu.dot_dimension_numbers<[1], [0], [0], [1], [0, 0, 1, 1], [], []>} : vector<8x8xf32>, vector<8x256xf32>, vector<8x256xf32> -> vector<8x256xf32>
    %115 = arith.addf %110, %114 : vector<8x256xf32>
    %c0_91 = arith.constant 0 : index
    %c144_92 = arith.constant 144 : index
    %116 = vector.load %arg8[%c0_91, %c144_92] : memref<8x512xf32, #tpu.memory_space<vmem>>, vector<8x256xf32>
    %c7_93 = arith.constant 7 : index
    %c0_94 = arith.constant 0 : index
    %c0_95 = arith.constant 0 : index
    %117 = vector.load %arg4[%c7_93, %c0_94, %c0_95] : memref<9x8x8xf32, #tpu.memory_space<vmem>>, vector<1x8x8xf32>
    %118 = vector.shape_cast %117 : vector<1x8x8xf32> to vector<8x8xf32>
    %cst_96 = arith.constant dense<0.000000e+00> : vector<8x256xf32>
    %119 = tpu.matmul %118, %116, %cst_96 {dimension_numbers = #tpu.dot_dimension_numbers<[1], [0], [0], [1], [0, 0, 1, 1], [], []>} : vector<8x8xf32>, vector<8x256xf32>, vector<8x256xf32> -> vector<8x256xf32>
    %120 = arith.addf %115, %119 : vector<8x256xf32>
    %c0_97 = arith.constant 0 : index
    %c113_98 = arith.constant 113 : index
    %121 = vector.load %arg8[%c0_97, %c113_98] : memref<8x512xf32, #tpu.memory_space<vmem>>, vector<8x256xf32>
    %c2_99 = arith.constant 2 : index
    %c0_100 = arith.constant 0 : index
    %c0_101 = arith.constant 0 : index
    %122 = vector.load %arg4[%c2_99, %c0_100, %c0_101] : memref<9x8x8xf32, #tpu.memory_space<vmem>>, vector<1x8x8xf32>
    %123 = vector.shape_cast %122 : vector<1x8x8xf32> to vector<8x8xf32>
    %cst_102 = arith.constant dense<0.000000e+00> : vector<8x256xf32>
    %124 = tpu.matmul %123, %121, %cst_102 {dimension_numbers = #tpu.dot_dimension_numbers<[1], [0], [0], [1], [0, 0, 1, 1], [], []>} : vector<8x8xf32>, vector<8x256xf32>, vector<8x256xf32> -> vector<8x256xf32>
    %c0_103 = arith.constant 0 : index
    %c129_104 = arith.constant 129 : index
    %125 = vector.load %arg8[%c0_103, %c129_104] : memref<8x512xf32, #tpu.memory_space<vmem>>, vector<8x256xf32>
    %c5_105 = arith.constant 5 : index
    %c0_106 = arith.constant 0 : index
    %c0_107 = arith.constant 0 : index
    %126 = vector.load %arg4[%c5_105, %c0_106, %c0_107] : memref<9x8x8xf32, #tpu.memory_space<vmem>>, vector<1x8x8xf32>
    %127 = vector.shape_cast %126 : vector<1x8x8xf32> to vector<8x8xf32>
    %cst_108 = arith.constant dense<0.000000e+00> : vector<8x256xf32>
    %128 = tpu.matmul %127, %125, %cst_108 {dimension_numbers = #tpu.dot_dimension_numbers<[1], [0], [0], [1], [0, 0, 1, 1], [], []>} : vector<8x8xf32>, vector<8x256xf32>, vector<8x256xf32> -> vector<8x256xf32>
    %129 = arith.addf %124, %128 : vector<8x256xf32>
    %c0_109 = arith.constant 0 : index
    %c145_110 = arith.constant 145 : index
    %130 = vector.load %arg8[%c0_109, %c145_110] : memref<8x512xf32, #tpu.memory_space<vmem>>, vector<8x256xf32>
    %c8_111 = arith.constant 8 : index
    %c0_112 = arith.constant 0 : index
    %c0_113 = arith.constant 0 : index
    %131 = vector.load %arg4[%c8_111, %c0_112, %c0_113] : memref<9x8x8xf32, #tpu.memory_space<vmem>>, vector<1x8x8xf32>
    %132 = vector.shape_cast %131 : vector<1x8x8xf32> to vector<8x8xf32>
    %cst_114 = arith.constant dense<0.000000e+00> : vector<8x256xf32>
    %133 = tpu.matmul %132, %130, %cst_114 {dimension_numbers = #tpu.dot_dimension_numbers<[1], [0], [0], [1], [0, 0, 1, 1], [], []>} : vector<8x8xf32>, vector<8x256xf32>, vector<8x256xf32> -> vector<8x256xf32>
    %134 = arith.addf %129, %133 : vector<8x256xf32>
    %135 = vector.broadcast %31 : vector<1x256xf32> to vector<8x256xf32>
    %136 = arith.mulf %106, %135 : vector<8x256xf32>
    %137 = arith.addf %136, %120 : vector<8x256xf32>
    %138 = vector.broadcast %35 : vector<1x256xf32> to vector<8x256xf32>
    %139 = arith.mulf %134, %138 : vector<8x256xf32>
    %140 = arith.addf %137, %139 : vector<8x256xf32>
    %c0_115 = arith.constant 0 : index
    %c0_116 = arith.constant 0 : index
    %141 = vector.load %arg5[%c0_115, %c0_116] : memref<8x1xf32, #tpu.memory_space<vmem>>, vector<8x1xf32>
    %142 = vector.broadcast %141 : vector<8x1xf32> to vector<8x256xf32>
    %143 = arith.addf %140, %142 : vector<8x256xf32>
    %cst_117 = arith.constant 0.000000e+00 : f32
    %144 = vector.broadcast %cst_117 : f32 to vector<8x256xf32>
    %145 = arith.cmpf oge, %143, %144 : vector<8x256xf32>
    %cst_118 = arith.constant 2.000000e-01 : f32
    %146 = vector.broadcast %cst_118 : f32 to vector<8x256xf32>
    %147 = arith.mulf %146, %143 : vector<8x256xf32>
    %148 = arith.select %145, %143, %147 : vector<8x256xi1>, vector<8x256xf32>
    %149 = vector.shape_cast %148 : vector<8x256xf32> to vector<1x8x256xf32>
    %c0_119 = arith.constant 0 : index
    %c0_120 = arith.constant 0 : index
    %c0_121 = arith.constant 0 : index
    %150 = vector.load %arg6[%c0_119, %c0_120, %c0_121] : memref<1x8x256xf32, #tpu.memory_space<vmem>>, vector<1x8x256xf32>
    tpu.vector_store %arg6[%c0_119, %c0_120, %c0_121], %149 {strides = array<i32>} : memref<1x8x256xf32, #tpu.memory_space<vmem>>, vector<1x8x256xf32>,
    return
  }
  func.func @transform_0(%arg0: i32) -> (i32, i32, i32) {
    %c0_i32 = arith.constant 0 : i32
    %c0_i32_0 = arith.constant 0 : i32
    %c0_i32_1 = arith.constant 0 : i32
    return %arg0, %c0_i32, %c0_i32_0 : i32, i32, i32
  }
  func.func @transform_1(%arg0: i32) -> (i32, i32, i32) {
    %c0_i32 = arith.constant 0 : i32
    %c0_i32_0 = arith.constant 0 : i32
    %c0_i32_1 = arith.constant 0 : i32
    %c0_i32_2 = arith.constant 0 : i32
    return %c0_i32, %c0_i32_0, %c0_i32_1 : i32, i32, i32
  }
  func.func @transform_2(%arg0: i32) -> (i32, i32) {
    %c0_i32 = arith.constant 0 : i32
    %c0_i32_0 = arith.constant 0 : i32
    %c0_i32_1 = arith.constant 0 : i32
    return %c0_i32, %c0_i32_0 : i32, i32
  }
  func.func @transform_3(%arg0: i32) -> (i32, i32, i32) {
    %c0_i32 = arith.constant 0 : i32
    %c0_i32_0 = arith.constant 0 : i32
    %c0_i32_1 = arith.constant 0 : i32
    %c0_i32_2 = arith.constant 0 : i32
    return %c0_i32, %c0_i32_0, %c0_i32_1 : i32, i32, i32
  }
  func.func @transform_4(%arg0: i32) -> (i32, i32) {
    %c0_i32 = arith.constant 0 : i32
    %c0_i32_0 = arith.constant 0 : i32
    %c0_i32_1 = arith.constant 0 : i32
    return %c0_i32, %c0_i32_0 : i32, i32
  }
  func.func @transform_5(%arg0: i32) -> (i32, i32, i32) {
    %c0_i32 = arith.constant 0 : i32
    %c0_i32_0 = arith.constant 0 : i32
    %c0_i32_1 = arith.constant 0 : i32
    return %arg0, %c0_i32, %c0_i32_0 : i32, i32, i32
  }
}

</mosaic_0001>

<bundles_post_ra>
// kernel: tpu_custom_call.1
= control target key start
LH: loop header
LB: loop body
LE: loop exit
PB: predicated region body
PF: predicated region fallthrough
CT: control target
= control target key end

     0   :  { %10 = vsyncpa [#allocation5], 0  ;;  %s2565_s0 = inlined_call_operand.vmem [shape: f32[2,4,256], index: 0, kind: input, shape index: {}]   ;;  %s2566_s1 = inlined_call_operand.vmem [shape: f32[9,8,4], index: 1, kind: input, shape index: {}]   ;;  %s2567_s2 = inlined_call_operand.vmem [shape: f32[8,1], index: 2, kind: input, shape index: {}]   ;;  %s2568_s3 = inlined_call_operand.vmem [shape: f32[9,8,8], index: 3, kind: input, shape index: {}]   ;;  %s2569_s4 = inlined_call_operand.vmem [shape: f32[8,1], index: 4, kind: input, shape index: {}]   ;;  %s2570_s5 = inlined_call_operand.hbm [shape: f32[2,8,256], index: 5, kind: output, shape index: {}]  }
   0x1   :  { %12 = vsyncpa [#allocation5 + $0x1], 0  ;;  %s2234_s18 = smov 0   ;;  %s2236_s19 = smov 0  }
   0x2   :  { %s2238_s20 = smov 0   ;;  %s2240_s21 = smov 0  }
   0x3 LB: > { %s2255_s22 = sadd.s32 4294967295, %s2191_s21   ;;  %s2009_s23 = sadd.s32 4294967294, %s2191_s21   ;;  %s2191_s21 = sphi %s2240_s21, %s2576_s21   ;;  %s2187_s20 = sphi %s2238_s20, %s2575_s20   ;;  %s2183_s19 = sphi %s2236_s19, %s2574_s19   ;;  %s2179_s18 = sphi %s2234_s18, %s2573_s18  }
   0x4   : > { %s2259_s24 = sadd.s32 1, %s2191_s21   ;;  %s135_s25 = sadd.s32 1, %s2187_s20 }
   0x5   : > { %s132_s26 = ssub.s32 %s2191_s21, %s2259_s24  ;;  %p145_p0 = scmp.ne.s32.totalorder %s2187_s20, %s2183_s19 }
   0x6   : > { %p133_p1 = scmp.eq.s32.totalorder %s132_s26, 0  ;;  %p146_p2 = scmp.eq.s32.totalorder %s2255_s22, 1 }
   0x7   : > { %p151_p3 = scmp.ne.s32.totalorder %s2183_s19, %s2179_s18  ;;  %p152_p4 = scmp.eq.s32.totalorder %s2009_s23, 1 }
   0x8   : > { %s2270_s27 = scalar_select %p133_p1, %s2187_s20, %s135_s25  }
   0x9   : > { %p2272_p5 = por %p146_p2, %p145_p0  ;;  %p2276_p6 = por %p152_p4, %p151_p3 }
   0xa   : > { %p2012_p7 = scmp.ge.s32.totalorder %s2191_s21, 1  ;;  %p190_p8 = scmp.lt.s32.totalorder %s2191_s21, 3 }
   0xc   : > { %p191_p9 = pnand %p2012_p7, %p190_p8 }
   0xd   : > { %p218_p10 = scmp.lt.s32.totalorder (!%p191_p9), %s2255_s22, 1  ;;  %s2194_s10 = smov (!%p191_p9), 113  }
   0xe   : > { %194 = sbr.rel (%p191_p9) target bundleno = 767 (0x2ff), region = 40  ;;  %s2195_s11 = smov (!%p191_p9), 1  }
   0xf   : > { %s2196_s12 = smov (!%p191_p9), 17   ;;  %s2197_s13 = smov (!%p191_p9), 16  }
  0x10   : > { %s2198_s14 = smov (!%p191_p9), 112   ;;  %s2199_s15 = smov (!%p191_p9), 127  }
  0x11   : > { %s2200_s16 = smov (!%p191_p9), 15   ;;  %s2202_s17 = smov (!%p191_p9), 111  }
  0x13   : > { %v2193_v0 = vmov 0.0   ;;  %s219_s30 = scalar_select %p218_p10, %s2255_s22, 1  ;;  %v2201_v11 = vmov 0   ;;  %v1113_v13 = vld [vmem:[%s2567_s2] sm:$0xff]  ;;  %vm371_vm0 = vcmask 138240   ;;  %vm289_vm1 = vcmask 1043456  }
  0x14   : > { %224 = vst [vmem:[#allocation2 + $0xc] sm:$0xf] %v2193_v0  ;;  %223 = vst [vmem:[#allocation2] sm:$0xf] %v2193_v0  ;;  %358 = vmatprep.mubr.f32.mxu0 %v2193_v0  ;;  %445 = vmatprep.mubr.f32.mxu1 %v2193_v0  ;;  %v270_v23 = vld [vmem:[%s2566_s1] sm:$0xff]  ;;  %vm282_vm2 = vcmask 7168  }
  0x15   : > { %s2077_s6 = sshll.u32 %s219_s30, 3  ;;  %2128 = vset.pattern.permute.xlu0 %v2201_v11  ;;  %vm285_vm3 = vcmask 31744   ;;  %v2020_v28 = vld [vmem:[%s2566_s1 + $0x18] sm:$0xff]  ;;  %v2032_v29 = vld [vmem:[%s2566_s1 + $0x20] sm:$0xff]  ;;  %vm465_vm4 = vcmask 924672   ;;  %v2027_v34 = vld [vmem:[%s2566_s1 + $0x30] sm:$0xff] }
  0x16   : > { %s222_s9 = scalar_lea.vmem %s2565_s0, %s2077_s6  ;;  %vm644_vm5 = vcmask 130048   ;;  %v2031_v38 = vld [vmem:[%s2566_s1 + $0x8] sm:$0xff]  ;;  %vm738_vm6 = vcmask 916480   ;;  %v2039_v45 = vld [vmem:[%s2566_s1 + $0x38] sm:$0xff]  ;;  %vm838_vm7 = vcmask 1039360   ;;  %vm928_vm8 = vcmask 121856  }
  0x17   : > { %v2291_v1 = vld [vmem:[%s222_s9] sm:$0xff]  ;;  %v2044_v50 = vld [vmem:[%s2566_s1 + $0x28] sm:$0xff]  ;;  %v2043_v56 = vld [vmem:[%s2566_s1 + $0x10] sm:$0xff]  ;;  %vm1022_vm9 = vcmask 908288  }
  0x18   : > { %228 = vst [vmem:[#allocation2 + $0x4] sm:$0xff] %v2291_v1  ;;  %v458_v6 = vcombine.high %v2291_v1, %v2291_v1  ;;  %v2051_v61 = vld [vmem:[%s2566_s1 + $0x40] sm:$0xff] }
  0x1b   : > { %v453_v2 = vld [vmem:[#allocation2 + $0xc] sm:$0xf] }
  0x1c   : > { %463 = vrot.lane.b32.xlu1 %v453_v2, %s2194_s10  ;;  %v726_v8 = vld [vmem:[#allocation2 + $0xc] sm:$0xf] }
  0x1d   : > { %v826_v9 = vld [vmem:[#allocation2 + $0xc] sm:$0xf] }
  0x1e   : > { %v1010_v12 = vld [vmem:[#allocation2 + $0xc] sm:$0xf] }
  0x1f   : > { %v269_v3 = vld [vmem:[#allocation2 + $0x8] sm:$0xf]  ;;  %v268_v4 = vld [vmem:[#allocation2] sm:$0xff] }
  0x20   : > { %280 = vrot.lane.b32.xlu0 %v269_v3, %s2195_s11  ;;  %276 = vrot.lane.b32.xlu1 %v268_v4, %s2195_s11  ;;  %v275_v5 = vcombine.high %v268_v4, %v268_v4  ;;  %v549_v7 = vld [vmem:[#allocation2 + $0x8] sm:$0xf] }
  0x21   : > { %v822_v10 = vld [vmem:[#allocation2 + $0x8] sm:$0xf] }
  0x24   : > { %369 = vrot.lane.b32.xlu0 %v269_v3, %s2196_s12  ;;  %365 = vrot.lane.b32.xlu1 %v268_v4, %s2196_s12 }
  0x28   : > { %459 = vrot.lane.b32.xlu0 %v2291_v1, %s2194_s10  ;;  %367 = vrot.lane.b32.xlu1 %v275_v5, %s2196_s12 }
  0x2c   : > { %278 = vrot.lane.b32.xlu0 %v275_v5, %s2195_s11  ;;  %640 = vrot.lane.b32.xlu1 %v275_v5, %s2197_s13 }
  0x30   : > { %461 = vrot.lane.b32.xlu0 %v458_v6, %s2194_s10  ;;  %638 = vrot.lane.b32.xlu1 %v268_v4, %s2197_s13 }
  0x34   : > { %642 = vrot.lane.b32.xlu0 %v549_v7, %s2197_s13  ;;  %736 = vrot.lane.b32.xlu1 %v726_v8, %s2198_s14 }
  0x38   : > { %734 = vrot.lane.b32.xlu0 %v458_v6, %s2198_s14  ;;  %834 = vrot.lane.b32.xlu1 %v458_v6, %s2199_s15 }
  0x3c   : > { %732 = vrot.lane.b32.xlu0 %v2291_v1, %s2198_s14  ;;  %832 = vrot.lane.b32.xlu1 %v2291_v1, %s2199_s15 }
  0x40   : > { %836 = vrot.lane.b32.xlu0 %v826_v9, %s2199_s15  ;;  %926 = vrot.lane.b32.xlu1 %v822_v10, %s2200_s16 }
  0x44   : > { %924 = vrot.lane.b32.xlu0 %v275_v5, %s2200_s16  ;;  %1018 = vrot.lane.b32.xlu1 %v458_v6, %s2202_s17 }
  0x48   : > { %922 = vrot.lane.b32.xlu0 %v268_v4, %s2200_s16  ;;  %1016 = vrot.lane.b32.xlu1 %v2291_v1, %s2202_s17 }
  0x4c   : > { %1020 = vrot.lane.b32.xlu0 %v1010_v12, %s2202_s17  ;;  %1223 = vrot.lane.b32.xlu1 %v2193_v0, %s2196_s12 }
  0x50   : > { %1116 = vperm.xlu0 %2128, %v1113_v13   ;;  %1319 = vrot.lane.b32.xlu1 %v2193_v0, %s2194_s10 }
  0x54   : > { %1479 = vrot.lane.b32.xlu1 %v2193_v0, %s2197_s13  ;;  %1138 = vrot.lane.b32.xlu0 %v2193_v0, %s2195_s11 }
  0x58   : > { %1569 = vrot.lane.b32.xlu1 %v2193_v0, %s2198_s14  ;;  %1659 = vrot.lane.b32.xlu0 %v2193_v0, %s2199_s15 }
  0x8e   : > { %v464_v14 = vpop.permute.xlu1 %463 }
  0x92   : > { %v281_v15 = vpop.permute.xlu0 %280  ;;  %v277_v16 = vpop.permute.xlu1 %276 }
  0x96   : > { %v370_v17 = vpop.permute.xlu0 %369  ;;  %v366_v18 = vpop.permute.xlu1 %365 }
  0x9a   : > { %v460_v19 = vpop.permute.xlu0 %459  ;;  %v368_v20 = vpop.permute.xlu1 %367 }
  0x9b   : > { %v373_v21 = vsel %vm371_vm0, %v368_v20, %v370_v17  ;;  %v372_v22 = vsel %vm371_vm0, %v366_v18, %v368_v20 }
  0x9c   : > { %2024 = vmatprep.subr.msk.mxu1 %vm289_vm1, %v373_v21 }
  0x9d   : > { %2025 = vmatpush1.msk.msra.mxu1 %vm289_vm1, %v372_v22 }
  0x9e   : > { %v279_v24 = vpop.permute.xlu0 %278  ;;  %v641_v25 = vpop.permute.xlu1 %640  ;;  %2033 = vmatprep.subr.msk.mxu1 %vm289_vm1, %v458_v6  ;;  %2026 = vmatmul.mubr.msk.f32.vlgmr.msra.gmra.mxu1 %vm285_vm3, %v270_v23  ;;  %v229_v6 = vlaneseq }
  0x9f   : > { %v284_v26 = vsel %vm282_vm2, %v279_v24, %v281_v15  ;;  %v283_v27 = vsel %vm282_vm2, %v277_v16, %v279_v24  ;;  %2034 = vmatpush1.msk.msra.mxu1 %vm289_vm1, %v2291_v1  ;;  %628 = vmatprep.mubr.f32.mxu1 %v2193_v0 }
  0xa0   : > { %2021 = vmatprep.subr.msk.mxu0 %vm289_vm1, %v284_v26  ;;  %v230_v9 = vand.u32 127, %v229_v6 }
  0xa1   : > { %2022 = vmatpush1.msk.msra.mxu0 %vm289_vm1, %v283_v27 }
  0xa2   : > { %v462_v30 = vpop.permute.xlu0 %461  ;;  %v639_v31 = vpop.permute.xlu1 %638  ;;  %2023 = vmatmul.mubr.msk.f32.vlgmr.msra.gmra.mxu0 %vm285_vm3, %v2020_v28  ;;  %2035 = vmatmul.mubr.msk.f32.vlgmr.msra.gmra.mxu1 %vm285_vm3, %v2032_v29  ;;  %v236_v11 = vand.u32 15, %v230_v9 }
  0xa3   : > { %v466_v32 = vsel %vm465_vm4, %v460_v19, %v462_v30  ;;  %v467_v33 = vsel %vm465_vm4, %v462_v30, %v464_v14  ;;  %539 = vmatprep.mubr.f32.mxu0 %v2193_v0  ;;  %812 = vmatprep.mubr.f32.mxu1 %v2193_v0  ;;  %v645_v39 = vsel %vm644_vm5, %v639_v31, %v641_v25  ;;  %v231_v14 = vadd.s32 128, %v230_v9 }
  0xa4   : > { %2028 = vmatprep.subr.msk.mxu0 %vm289_vm1, %v467_v33  ;;  %vm256_vm10 = vcmp.ne.s32.totalorder %v236_v11, 0  ;;  %vm262_vm11 = vcmp.ne.s32.totalorder %v236_v11, 15  ;;  %v1132_v11 = vld [vmem:[%s2568_s3] sm:$0xff] }
  0xa5   : > { %2029 = vmatpush1.msk.msra.mxu0 %vm289_vm1, %v466_v32  ;;  %v243_v19 = vand.u32 15, %v231_v14  ;;  %v2420_v22 = vsel %vm256_vm10, 1.0, %v2193_v0  ;;  %v2424_v29 = vsel %vm262_vm11, 1.0, %v2193_v0 }
  0xa6   : > { %v643_v35 = vpop.permute.xlu0 %642  ;;  %v737_v36 = vpop.permute.xlu1 %736  ;;  %2030 = vmatmul.mubr.msk.f32.vlgmr.msra.gmra.mxu0 %vm285_vm3, %v2027_v34 }
  0xa7   : > { %v646_v37 = vsel %vm644_vm5, %v641_v25, %v643_v35  ;;  %718 = vmatprep.mubr.f32.mxu0 %v2193_v0  ;;  %vm257_vm12 = vcmp.ne.s32.totalorder %v243_v19, 0  ;;  %vm263_vm13 = vcmp.ne.s32.totalorder %v243_v19, 15 }
  0xa8   : > { %2036 = vmatprep.subr.msk.mxu0 %vm289_vm1, %v646_v37  ;;  %v2427_v35 = vsel %vm257_vm12, 1.0, %v2193_v0 }
  0xa9   : > { %2037 = vmatpush1.msk.msra.mxu0 %vm289_vm1, %v645_v39 }
  0xaa   : > { %v735_v40 = vpop.permute.xlu0 %734  ;;  %v835_v41 = vpop.permute.xlu1 %834  ;;  %2038 = vmatmul.mubr.msk.f32.vlgmr.msra.gmra.mxu0 %vm285_vm3, %v2031_v38 }
  0xab   : > { %v740_v42 = vsel %vm738_vm6, %v735_v40, %v737_v36  ;;  %912 = vmatprep.mubr.f32.mxu0 %v2193_v0 }
  0xac   : > { %2040 = vmatprep.subr.msk.mxu1 %vm289_vm1, %v740_v42 }
  0xae   : > { %v733_v43 = vpop.permute.xlu0 %732  ;;  %v833_v44 = vpop.permute.xlu1 %832 }
  0xaf   : > { %v739_v46 = vsel %vm738_vm6, %v733_v43, %v735_v40  ;;  %v839_v51 = vsel %vm838_vm7, %v833_v44, %v835_v41  ;;  %v2431_v40 = vsel %vm263_vm13, 1.0, %v2193_v0 }
  0xb0   : > { %2041 = vmatpush1.msk.msra.mxu1 %vm289_vm1, %v739_v46 }
  0xb1   : > { %2042 = vmatmul.mubr.msk.f32.vlgmr.msra.gmra.mxu1 %vm285_vm3, %v2039_v45 }
  0xb2   : > { %v837_v47 = vpop.permute.xlu0 %836  ;;  %v927_v48 = vpop.permute.xlu1 %926  ;;  %1002 = vmatprep.mubr.f32.mxu1 %v2193_v0 }
  0xb3   : > { %v840_v49 = vsel %vm838_vm7, %v835_v41, %v837_v47 }
  0xb4   : > { %2045 = vmatprep.subr.msk.mxu0 %vm289_vm1, %v840_v49 }
  0xb5   : > { %2046 = vmatpush1.msk.msra.mxu0 %vm289_vm1, %v839_v51 }
  0xb6   : > { %v925_v52 = vpop.permute.xlu0 %924  ;;  %2047 = vmatmul.mubr.msk.f32.vlgmr.msra.gmra.mxu0 %vm285_vm3, %v2044_v50  ;;  %v1019_v54 = vpop.permute.xlu1 %1018 }
  0xb7   : > { %v930_v53 = vsel %vm928_vm8, %v925_v52, %v927_v48  ;;  %1096 = vmatprep.mubr.f32.mxu0 %v2193_v0 }
  0xb8   : > { %2048 = vmatprep.subr.msk.mxu1 %vm289_vm1, %v930_v53 }
  0xba   : > { %v923_v55 = vpop.permute.xlu0 %922  ;;  %v1017_v58 = vpop.permute.xlu1 %1016 }
  0xbb   : > { %v929_v57 = vsel %vm928_vm8, %v923_v55, %v925_v52  ;;  %v1023_v62 = vsel %vm1022_vm9, %v1017_v58, %v1019_v54 }
  0xbc   : > { %2049 = vmatpush1.msk.msra.mxu1 %vm289_vm1, %v929_v57 }
  0xbd   : > { %2050 = vmatmul.mubr.msk.f32.vlgmr.msra.gmra.mxu1 %vm285_vm3, %v2043_v56 }
  0xbe   : > { %v1021_v59 = vpop.permute.xlu0 %1020  ;;  %1216 = vmatprep.mubr.f32.mxu1 %v2193_v0  ;;  %v1224_v55 = vpop.permute.xlu1 %1223 }
  0xbf   : > { %v1024_v60 = vsel %vm1022_vm9, %v1019_v54, %v1021_v59  ;;  %v1919_v54 = vld [vmem:[%s2569_s4] sm:$0xff] }
  0xc0   : > { %2052 = vmatprep.subr.msk.mxu0 %vm289_vm1, %v1024_v60 }
  0xc1   : > { %2053 = vmatpush1.msk.msra.mxu0 %vm289_vm1, %v1023_v62  ;;  %vm1148_vm1 = vcmask 64512  }
  0xc2   : > { %2054 = vmatmul.mubr.msk.f32.vlgmr.msra.gmra.mxu0 %vm285_vm3, %v2051_v61  ;;  %v1320_v56 = vpop.permute.xlu1 %1319 }
  0xc3   : > { %1300 = vmatprep.mubr.f32.mxu0 %v2193_v0 }
  0xc6   : > { %v1480_v57 = vpop.permute.xlu1 %1479 }
  0xca   : > { %v1570_v59 = vpop.permute.xlu1 %1569 }
  0xcb   : > { %v1117_v41 = vpop.permute.xlu0 %1116 }
  0xcf   : > { %v1139_v58 = vpop.permute.xlu0 %1138 }
  0xd3   : > { %v1660_v60 = vpop.permute.xlu0 %1659 }
 0x15e   : > { %v447_v1 = vpop.f32.mrf.mxu1 }
 0x160   : > { %v449_v3 = vpop.f32.mrf.mxu1 }
 0x162   : > { %v360_v63 = vpop.f32.mrf.mxu0  ;;  %v630_v5 = vpop.f32.mrf.mxu1 }
 0x163   : > { %v448_v13 = vadd.f32 %v447_v1, %v360_v63 }
 0x164   : > { %v362_v2 = vpop.f32.mrf.mxu0  ;;  %v632_v8 = vpop.f32.mrf.mxu1 }
 0x165   : > { %v450_v23 = vadd.f32 %v449_v3, %v362_v2 }
 0x166   : > { %v541_v4 = vpop.f32.mrf.mxu0 }
 0x167   : > { %v546_v18 = vadd.f32 %v541_v4, %v448_v13 }
 0x168   : > { %v543_v7 = vpop.f32.mrf.mxu0 }
 0x169   : > { %v1105_v26 = vmul.f32 %v2420_v22, %v546_v18  ;;  %v547_v31 = vadd.f32 %v543_v7, %v450_v23 }
 0x16a   : > { %v720_v10 = vpop.f32.mrf.mxu0 }
 0x16b   : > { %v721_v20 = vadd.f32 %v720_v10, %v630_v5  ;;  %v1106_v42 = vmul.f32 %v2427_v35, %v547_v31  ;;  %v2064_v31 = vld [vmem:[%s2568_s3 + $0x38] sm:$0xff] }
 0x16c   : > { %v722_v15 = vpop.f32.mrf.mxu0 }
 0x16d   : > { %v723_v32 = vadd.f32 %v722_v15, %v632_v8  ;;  %v2055_v8 = vld [vmem:[%s2568_s3 + $0x18] sm:$0xff] }
 0x171   : > { %v814_v12 = vpop.f32.mrf.mxu1 }
 0x172   : > { %v819_v27 = vadd.f32 %v814_v12, %v721_v20 }
 0x173   : > { %v816_v16 = vpop.f32.mrf.mxu1 }
 0x174   : > { %v1107_v37 = vadd.f32 %v1105_v26, %v819_v27  ;;  %v820_v43 = vadd.f32 %v816_v16, %v723_v32  ;;  %v2058_v16 = vld [vmem:[%s2568_s3 + $0x30] sm:$0xff]  ;;  %v2067_v32 = vld [vmem:[%s2568_s3 + $0x28] sm:$0xff] }
 0x176   : > { %v914_v17 = vpop.f32.mrf.mxu0  ;;  %v1108_v47 = vadd.f32 %v1106_v42, %v820_v43 }
 0x178   : > { %v916_v24 = vpop.f32.mrf.mxu0 }
 0x17d   : > { %v1004_v21 = vpop.f32.mrf.mxu1 }
 0x17e   : > { %v1005_v28 = vadd.f32 %v1004_v21, %v914_v17  ;;  %v2061_v17 = vld [vmem:[%s2568_s3 + $0x20] sm:$0xff]  ;;  %v2060_v21 = vld [vmem:[%s2568_s3 + $0x8] sm:$0xff] }
 0x17f   : > { %v1006_v25 = vpop.f32.mrf.mxu1 }
 0x180   : > { %v1007_v33 = vadd.f32 %v1006_v25, %v916_v24 }
 0x182   : > { %v1098_v30 = vpop.f32.mrf.mxu0 }
 0x183   : > { %v1103_v34 = vadd.f32 %v1098_v30, %v1005_v28 }
 0x184   : > { %v1100_v36 = vpop.f32.mrf.mxu0 }
 0x185   : > { %v1109_v38 = vmul.f32 %v2424_v29, %v1103_v34  ;;  %v1104_v39 = vadd.f32 %v1100_v36, %v1007_v33 }
 0x187   : > { %v1111_v44 = vadd.f32 %v1109_v38, %v1107_v37  ;;  %v1110_v45 = vmul.f32 %v2431_v40, %v1104_v39  ;;  %v2066_v38 = vld [vmem:[%s2568_s3 + $0x10] sm:$0xff] }
 0x189   : > { %v1119_v46 = vadd.f32 %v1117_v41, %v1111_v44  ;;  %v1112_v49 = vadd.f32 %v1110_v45, %v1108_v47  ;;  %v2070_v44 = vld [vmem:[%s2568_s3 + $0x40] sm:$0xff] }
 0x18b   : > { %vm1121_vm14 = vcmp.ge.f32.partialorder %v1119_v46, 0.0  ;;  %v1123_v48 = vmul.f32 0.2, %v1119_v46  ;;  %v1120_v51 = vadd.f32 %v1117_v41, %v1112_v49 }
 0x18d   : > { %v1125_v50 = vsel %vm1121_vm14, %v1119_v46, %v1123_v48  ;;  %v1124_v52 = vmul.f32 0.2, %v1120_v51  ;;  %vm1122_vm15 = vcmp.ge.f32.partialorder %v1120_v51, 0.0 }
 0x18e   : > { %1315 = vrot.lane.b32.xlu0 %v1125_v50, %s2194_s10  ;;  %1140 = vrot.lane.b32.xlu1 %v1125_v50, %s2195_s11 }
 0x18f   : > { %v1126_v53 = vsel %vm1122_vm15, %v1120_v51, %v1124_v52 }
 0x192   : > { %1565 = vrot.lane.b32.xlu0 %v1125_v50, %s2198_s14  ;;  %1225 = vrot.lane.b32.xlu1 %v1125_v50, %s2196_s12 }
 0x196   : > { %1741 = vrot.lane.b32.xlu0 %v1125_v50, %s2200_s16  ;;  %1481 = vrot.lane.b32.xlu1 %v1125_v50, %s2197_s13 }
 0x19a   : > { %1227 = vrot.lane.b32.xlu0 %v1126_v53, %s2196_s12  ;;  %1142 = vrot.lane.b32.xlu1 %v1126_v53, %s2195_s11 }
 0x19e   : > { %1317 = vrot.lane.b32.xlu0 %v1126_v53, %s2194_s10  ;;  %1655 = vrot.lane.b32.xlu1 %v1125_v50, %s2199_s15 }
 0x1a2   : > { %1483 = vrot.lane.b32.xlu0 %v1126_v53, %s2197_s13  ;;  %1657 = vrot.lane.b32.xlu1 %v1126_v53, %s2199_s15 }
 0x1a6   : > { %1567 = vrot.lane.b32.xlu0 %v1126_v53, %s2198_s14  ;;  %1743 = vrot.lane.b32.xlu1 %v1126_v53, %s2200_s16  ;;  %s215_s14 = sand.u32 1, %s2183_s19  }
 0x1a7   : > { %s2013_s15 = sshll.u32 %s215_s14, 4  ;;  %s1936_s23 = scalar_lea.sflag [#allocation5], %s215_s14 }
 0x1aa   : > { %1739 = vrot.lane.b32.xlu0 %v2193_v0, %s2200_s16  ;;  %1827 = vrot.lane.b32.xlu1 %v1126_v53, %s2202_s17  ;;  %s2078_s16 = sshll.u32 %s2255_s22, 8  ;;  %s2203_s22 = smov [#allocation4]  }
 0x1ab   : > { %s2528_s9 = scalar_lea.hbm %s2570_s5, %s2078_s16  ;;  %s2135_s26 = sshll.u32 %s2203_s22, 4  ;;  %s2136_s26 = int_to_ptr.vmem [resolvable:$false] %s2135_s26 }
 0x1ac   : > { %s2137_s30 = scalar_lea.vmem %s2136_s26, 512 }
 0x1ae   : > { %1829 = vrot.lane.b32.xlu0 %v2193_v0, %s2202_s17  ;;  %1825 = vrot.lane.b32.xlu1 %v1125_v50, %s2202_s17  ;;  %s217_s17 = scalar_lea.vmem [#allocation4], %s2013_s15 }
 0x1af   : > { %s1950_s6 = sshll.u32 %s217_s17, 4  ;;  %s1951_s6 = int_to_ptr.vmem [resolvable:$true] %s1950_s6 }
 0x1b0   : > { %s2131_s25 = scalar_lea.vmem %s1951_s6, 256  ;;  %p2138_p0 = scmp.lt.s32.totalorder %s1951_s6, %s2136_s26 }
 0x1b1   : > { %p2132_p11 = scmp.ne.s32.totalorder %s1951_s6, %s2131_s25  ;;  %p2139_p1 = scmp.lt.s32.totalorder %s2137_s30, %s2131_s25 }
 0x1b2   : > { %1922 = vperm.xlu0 %2128, %v1919_v54  }
 0x1b3   : > { %p2133_p12 = pnand %p2132_p11, %p2272_p5  ;;  %p2140_p2 = por %p2139_p1, %p2138_p0 }
 0x1b5   : > { %p2134_p13 = pneg %p2133_p12 }
 0x1b7   : > { %p2141_p3 = pnand %p2140_p2, %p2134_p13 }
 0x200   : > { %v1141_v61 = vpop.permute.xlu1 %1140  ;;  %v1316_v62 = vpop.permute.xlu0 %1315 }
 0x201   : > { %v1144_v9 = vsel %vm282_vm2, %v1139_v58, %v1141_v61 }
 0x204   : > { %v1226_v63 = vpop.permute.xlu1 %1225  ;;  %v1566_v1 = vpop.permute.xlu0 %1565 }
 0x205   : > { %v1229_v10 = vsel %vm371_vm0, %v1224_v55, %v1226_v63 }
 0x208   : > { %v1482_v2 = vpop.permute.xlu1 %1481  ;;  %v1742_v3 = vpop.permute.xlu0 %1741 }
 0x209   : > { %v1485_v23 = vsel %vm644_vm5, %v1480_v57, %v1482_v2 }
 0x20c   : > { %v1143_v4 = vpop.permute.xlu1 %1142  ;;  %v1228_v5 = vpop.permute.xlu0 %1227 }
 0x20d   : > { %v1145_v6 = vsel %vm282_vm2, %v1141_v61, %v1143_v4  ;;  %v1230_v7 = vsel %vm371_vm0, %v1226_v63, %v1228_v5 }
 0x20e   : > { %1182 = vmatprep.subr.mxu1 %v1145_v6  ;;  %1266 = vmatprep.subr.mxu0 %v1230_v7 }
 0x20f   : > { %1183 = vmatpush1.msra.mxu1 %v1144_v9  ;;  %1267 = vmatpush1.msra.mxu0 %v1229_v10 }
 0x210   : > { %v1656_v12 = vpop.permute.xlu1 %1655  ;;  %1438 = vmatprep.subr.mxu0 %v1126_v53  ;;  %v1318_v13 = vpop.permute.xlu0 %1317  ;;  %2056 = vmatmul.mubr.msk.f32.vlgmr.msra.gmra.mxu1 %vm1148_vm1, %v2055_v8 }
 0x211   : > { %v1321_v14 = vsel %vm465_vm4, %v1316_v62, %v1318_v13  ;;  %2057 = vmatmul.mubr.msk.f32.vlgmr.msra.gmra.mxu0 %vm1148_vm1, %v1132_v11  ;;  %v1322_v15 = vsel %vm465_vm4, %v1318_v13, %v1320_v56  ;;  %1392 = vmatprep.mubr.f32.mxu1 %v2193_v0 }
 0x212   : > { %1439 = vmatpush1.msra.mxu0 %v1125_v50  ;;  %1358 = vmatprep.subr.mxu1 %v1322_v15 }
 0x213   : > { %1359 = vmatpush1.msra.mxu1 %v1321_v14  ;;  %1472 = vmatprep.mubr.f32.mxu0 %v2193_v0 }
 0x214   : > { %v1658_v18 = vpop.permute.xlu1 %1657  ;;  %v1484_v19 = vpop.permute.xlu0 %1483  ;;  %2059 = vmatmul.mubr.msk.f32.vlgmr.msra.gmra.mxu1 %vm1148_vm1, %v2058_v16 }
 0x215   : > { %v1486_v20 = vsel %vm644_vm5, %v1482_v2, %v1484_v19  ;;  %2062 = vmatmul.mubr.msk.f32.vlgmr.msra.gmra.mxu0 %vm1148_vm1, %v2061_v17  ;;  %1556 = vmatprep.mubr.f32.mxu1 %v2193_v0  ;;  %v1662_v24 = vsel %vm838_vm7, %v1658_v18, %v1660_v60  ;;  %v1661_v25 = vsel %vm838_vm7, %v1656_v12, %v1658_v18 }
 0x216   : > { %1522 = vmatprep.subr.mxu1 %v1486_v20  ;;  %1642 = vmatprep.mubr.f32.mxu0 %v2193_v0 }
 0x217   : > { %1523 = vmatpush1.msra.mxu1 %v1485_v23 }
 0x218   : > { %v1744_v26 = vpop.permute.xlu1 %1743  ;;  %1698 = vmatprep.subr.mxu1 %v1662_v24  ;;  %v1568_v27 = vpop.permute.xlu0 %1567  ;;  %2063 = vmatmul.mubr.msk.f32.vlgmr.msra.gmra.mxu1 %vm1148_vm1, %v2060_v21 }
 0x219   : > { %v1571_v28 = vsel %vm738_vm6, %v1566_v1, %v1568_v27  ;;  %1699 = vmatpush1.msra.mxu1 %v1661_v25  ;;  %v1572_v30 = vsel %vm738_vm6, %v1568_v27, %v1570_v59  ;;  %1732 = vmatprep.mubr.f32.mxu1 %v2193_v0  ;;  %v1746_v33 = vsel %vm928_vm8, %v1742_v3, %v1744_v26 }
 0x21a   : > { %1608 = vmatprep.subr.mxu0 %v1572_v30 }
 0x21b   : > { %1609 = vmatpush1.msra.mxu0 %v1571_v28 }
 0x21c   : > { %v1828_v34 = vpop.permute.xlu1 %1827  ;;  %2065 = vmatmul.mubr.msk.f32.vlgmr.msra.gmra.mxu0 %vm1148_vm1, %v2064_v31  ;;  %1782 = vmatprep.subr.mxu0 %v1746_v33  ;;  %v1740_v36 = vpop.permute.xlu0 %1739 }
 0x21d   : > { %v1745_v37 = vsel %vm928_vm8, %v1740_v36, %v1742_v3  ;;  %2068 = vmatmul.mubr.msk.f32.vlgmr.msra.gmra.mxu1 %vm1148_vm1, %v2067_v32  ;;  %1816 = vmatprep.mubr.f32.mxu0 %v2193_v0 }
 0x21e   : > { %1783 = vmatpush1.msra.mxu0 %v1745_v37  ;;  %1902 = vmatprep.mubr.f32.mxu1 %v2193_v0 }
 0x220   : > { %v1826_v39 = vpop.permute.xlu1 %1825  ;;  %v1830_v41 = vpop.permute.xlu0 %1829  ;;  %2069 = vmatmul.mubr.msk.f32.vlgmr.msra.gmra.mxu0 %vm1148_vm1, %v2066_v38 }
 0x221   : > { %v1831_v42 = vsel %vm1022_vm9, %v1826_v39, %v1828_v34  ;;  %v1832_v43 = vsel %vm1022_vm9, %v1828_v34, %v1830_v41 }
 0x222   : > { %1868 = vmatprep.subr.mxu1 %v1832_v43 }
 0x223   : > { %1869 = vmatpush1.msra.mxu1 %v1831_v42 }
 0x224   : > { %2071 = vmatmul.mubr.msk.f32.vlgmr.msra.gmra.mxu1 %vm1148_vm1, %v2070_v44 }
 0x22d   : > { %v1923_v18 = vpop.permute.xlu0 %1922 }
 0x2d0   : > { %v1218_v45 = vpop.f32.mrf.mxu1 }
 0x2d1   : > { %v1302_v46 = vpop.f32.mrf.mxu0 }
 0x2d2   : > { %v1220_v47 = vpop.f32.mrf.mxu1  ;;  %v1303_v55 = vadd.f32 %v1302_v46, %v1218_v45 }
 0x2d3   : > { %v1304_v0 = vpop.f32.mrf.mxu0 }
 0x2d4   : > { %v1394_v48 = vpop.f32.mrf.mxu1  ;;  %v1305_v58 = vadd.f32 %v1304_v0, %v1220_v47 }
 0x2d5   : > { %v1474_v49 = vpop.f32.mrf.mxu0  ;;  %v1399_v61 = vadd.f32 %v1394_v48, %v1303_v55 }
 0x2d6   : > { %v1396_v50 = vpop.f32.mrf.mxu1 }
 0x2d7   : > { %v1476_v51 = vpop.f32.mrf.mxu0  ;;  %v1400_v1 = vadd.f32 %v1396_v50, %v1305_v58  ;;  %v1911_v6 = vmul.f32 %v2420_v22, %v1399_v61 }
 0x2d8   : > { %v1558_v52 = vpop.f32.mrf.mxu1 }
 0x2d9   : > { %v1559_v59 = vadd.f32 %v1558_v52, %v1474_v49  ;;  %v1912_v11 = vmul.f32 %v2427_v35, %v1400_v1 }
 0x2da   : > { %v1560_v53 = vpop.f32.mrf.mxu1 }
 0x2db   : > { %v1561_v2 = vadd.f32 %v1560_v53, %v1476_v51 }
 0x2dc   : > { %v1644_v54 = vpop.f32.mrf.mxu0 }
 0x2dd   : > { %v1734_v57 = vpop.f32.mrf.mxu1  ;;  %v1649_v3 = vadd.f32 %v1644_v54, %v1559_v59 }
 0x2de   : > { %v1646_v56 = vpop.f32.mrf.mxu0 }
 0x2df   : > { %v1736_v62 = vpop.f32.mrf.mxu1  ;;  %v1650_v7 = vadd.f32 %v1646_v56, %v1561_v2  ;;  %v1913_v12 = vadd.f32 %v1911_v6, %v1649_v3 }
 0x2e0   : > { %v1818_v60 = vpop.f32.mrf.mxu0 }
 0x2e1   : > { %v1819_v4 = vadd.f32 %v1818_v60, %v1734_v57  ;;  %v1914_v15 = vadd.f32 %v1912_v11, %v1650_v7 }
 0x2e2   : > { %v1820_v63 = vpop.f32.mrf.mxu0 }
 0x2e3   : > { %v1821_v8 = vadd.f32 %v1820_v63, %v1736_v62 }
 0x2e4   : > { %v1904_v5 = vpop.f32.mrf.mxu1 }
 0x2e5   : > { %v1909_v9 = vadd.f32 %v1904_v5, %v1819_v4 }
 0x2e6   : > { %v1906_v10 = vpop.f32.mrf.mxu1 }
 0x2e7   : > { %v1915_v13 = vmul.f32 %v2424_v29, %v1909_v9  ;;  %v1910_v14 = vadd.f32 %v1906_v10, %v1821_v8 }
 0x2e9   : > { %v1917_v16 = vadd.f32 %v1915_v13, %v1913_v12  ;;  %v1916_v17 = vmul.f32 %v2431_v40, %v1910_v14 }
 0x2eb   : > { %v1925_v19 = vadd.f32 %v1923_v18, %v1917_v16  ;;  %v1918_v22 = vadd.f32 %v1916_v17, %v1914_v15 }
 0x2ed   : > { %v1929_v20 = vmul.f32 0.2, %v1925_v19  ;;  %v1926_v21 = vadd.f32 %v1923_v18, %v1918_v22  ;;  %vm1927_vm0 = vcmp.ge.f32.partialorder %v1925_v19, 0.0 }
 0x2ef   : > { %v1930_v35 = vmul.f32 0.2, %v1926_v21  ;;  %vm1928_vm2 = vcmp.ge.f32.partialorder %v1926_v21, 0.0  ;;  %v1931_v29 = vsel %vm1927_vm0, %v1925_v19, %v1929_v20 }
 0x2f0   : > { %1933 = vst [vmem:[%s217_s17] sm:$0xff] %v1931_v29 }
 0x2f1   : > { %v1932_v40 = vsel %vm1928_vm2, %v1926_v21, %v1930_v35 }
 0x2f2   : > { %1934 = vst [vmem:[%s217_s17 + $0x8] sm:$0xff] %v1932_v40 }
 0x2f3   : > { %2144 = shalt.err (!%p2141_p3)
}
 0x2f4   : > { %s2145_s10 = scalar_lea.hbm %s2528_s9, 256  ;;  %s2149_s13 = scalar_lea.hbm %s2570_s5, 512 }
 0x2f5   : > { %p2146_p4 = scmp.ne.s32.totalorder %s2528_s9, %s2145_s10  ;;  %p2150_p9 = scmp.lt.s32.totalorder %s2528_s9, %s2570_s5 }
 0x2f6   : > { %p2151_p10 = scmp.lt.s32.totalorder %s2149_s13, %s2145_s10 }
 0x2f7   : > { %p2147_p7 = pnand %p2146_p4, %p2272_p5 }
 0x2f8   : > { %p2152_p11 = por %p2151_p10, %p2150_p9 }
 0x2f9   : > { %p2148_p8 = pneg %p2147_p7 }
 0x2fb   : > { %p2153_p12 = pnand %p2152_p11, %p2148_p8 }
 0x2fd   : > { %2156 = shalt.err (!%p2153_p12)
}
 0x2fe   : > { %2079 = dma.vmem_to_hbm [thread:$0]  (%p2272_p5), %s1951_s6, 256, %s2528_s9, %s1936_s23  }
 0x2ff PF: > { %p2085_p13 = scmp.ge.s32.totalorder %s2191_s21, 2  ;;  %s1962_s16 = sand.u32 1, %s2179_s18  }
 0x300   : > { %s1963_s17 = scalar_lea.sflag [#allocation5], %s1962_s16 }
 0x301   : > { %p2082_p0 = pnand %p2085_p13, %p2276_p6 }
 0x303   : > { %p2083_p1 = pneg %p2082_p0 }
 0x305   : > { %2174 = dma.done.wait (%p2083_p1), %s1963_s17, 256  }
 0x306   : > { %2176 = vsyncadd (%p2083_p1), %s1963_s17, 4294967040  ;;  %p15_p2 = scmp.ge.s32.totalorder %s2259_s24, 4   ;;  %s2573_s18 = smov %s2183_s19 }
 0x307   : > { %s2574_s19 = smov %s2187_s20  ;;  %s2575_s20 = smov %s2270_s27 }
 0x308   : > { %s2576_s21 = smov %s2259_s24  ;;  %17 = sbr.rel (!%p15_p2) target bundleno = 3 (0x3), region = 91 }
 0x30d   :  { %1968 = vsyncpa [#allocation5], 1 }
 0x30e   :  { %1970 = vsyncpa [#allocation5 + $0x1], 1 }

</bundles_post_ra>
